<compile_context>
chip_gen: v7x
topology: tpu7x:2x2x1
jax: 0.10.0
libtpu: 0.0.40
codegen_flags: <defaults>
</compile_context>

<pallas_src>
import jax
import jax.numpy as jnp
from jax.experimental import pallas as pl
from jax.experimental.pallas import tpu as pltpu


def _round_up(x, m):
    return (x + m - 1) // m * m


def tweet_tagger_kernel(x_ref, w1_ref, w2_ref, wo_ref, vec_ref, o_ref):
    """One batch tile: fc1 -> RoSwish -> fc2 -> RoSwish -> fc_out (eval mode)."""
    H = w1_ref.shape[1]
    N_pad = wo_ref.shape[1]

    x = x_ref[...]                       # (TB, In) f32
    vecs = vec_ref[...]                  # (8, Wpack) f32: packed small vectors
    b1 = vecs[0:1, :H]
    b2 = vecs[1:2, :H]
    bo = vecs[2:3, :N_pad]
    alpha = vecs[3:4, :H]                # broadcast over batch rows
    beta = vecs[4:5, :H]
    half_alpha = vecs[5:6, :H]           # alpha / 2, precomputed host-side

    def roswish(h):
        # RoSwish(h) = (h + alpha) * sigmoid(h * beta) - alpha / 2
        # exp and the approx reciprocal both issue on the EUP slot (free-ish).
        sig = pl.reciprocal(1.0 + jnp.exp(-h * beta), approx=True)
        return (h + alpha) * sig - half_alpha

    # fc1: bf16 MXU operands, f32 accumulate; RoSwish in f32.
    h1 = jnp.dot(x.astype(w1_ref.dtype), w1_ref[...],
                 preferred_element_type=jnp.float32) + b1
    h1 = roswish(h1)
    # dropout(p=0.8): identity in eval mode.
    # TODO(synk): training-mode dropout (pltpu.prng_random_bits mask) not implemented.

    # fc2
    h2 = jnp.dot(h1.astype(w2_ref.dtype), w2_ref[...],
                 preferred_element_type=jnp.float32) + b2
    h2 = roswish(h2)

    # fc_out into a lane-dense (TB, 128) slab (columns >= num_tags are zero).
    o_ref[...] = (jnp.dot(h2.astype(wo_ref.dtype), wo_ref[...],
                          preferred_element_type=jnp.float32) + bo
                  ).astype(o_ref.dtype)


def prepare_params(params):
    """Pad / pack / downcast the f32 master params into kernel-ready operands."""
    H = params["w1"].shape[1]
    num_tags = params["wo"].shape[1]
    n_pad = _round_up(num_tags, 128)          # lane-dense fc_out width
    w_pack = max(H, n_pad)

    w1 = params["w1"].astype(jnp.bfloat16)
    w2 = params["w2"].astype(jnp.bfloat16)
    wo = jnp.zeros((H, n_pad), jnp.float32).at[:, :num_tags].set(params["wo"])
    wo = wo.astype(jnp.bfloat16)              # zero-padded columns stay exactly 0

    def row(v, width):
        return jnp.zeros((1, w_pack), jnp.float32).at[:, :width].set(v)

    vec = jnp.concatenate([
        row(params["b1"], H),
        row(params["b2"], H),
        row(params["bo"], num_tags),
        row(params["alpha"], H),
        row(params["beta"], H),
        row(params["alpha"] * 0.5, H),
        jnp.zeros((2, w_pack), jnp.float32),   # pad to 8 sublanes
    ], axis=0)                                 # (8, Wpack)

    return {"w1": w1, "w2": w2, "wo": wo, "vec": vec, "num_tags": num_tags}


def tweet_tagger_forward(x, prepped, *, block_rows=512):
    """x: (B, input_size) f32. prepped: output of prepare_params."""
    B, in_size = x.shape
    w1, w2, wo, vec = prepped["w1"], prepped["w2"], prepped["wo"], prepped["vec"]
    num_tags = prepped["num_tags"]
    H = w1.shape[1]
    n_pad = wo.shape[1]
    w_pack = vec.shape[1]

    tb = min(block_rows, _round_up(B, 8))      # batch tile (rows), multiple of 8
    grid = (pl.cdiv(B, tb),)

    # Pad batch so every grid tile is full (padded rows are independent garbage
    # rows; they are sliced off below and never affect valid rows).
    b_pad = grid[0] * tb
    x_in = x if b_pad == B else jnp.pad(x, ((0, b_pad - B), (0, 0)))

    flops = 2 * b_pad * (in_size * H + H * H + H * n_pad)
    transcendentals = 2 * b_pad * H
    bytes_accessed = (x_in.size * 4 + (w1.size + w2.size + wo.size) * 2
                      + vec.size * 4 + b_pad * n_pad * 4)

    out_padded = pl.pallas_call(
        tweet_tagger_kernel,
        out_shape=jax.ShapeDtypeStruct((b_pad, n_pad), jnp.float32),
        grid=grid,
        in_specs=[
            pl.BlockSpec((tb, in_size), lambda i: (i, 0)),   # x: streamed per tile
            pl.BlockSpec((in_size, H), lambda i: (0, 0)),    # weights: VMEM-resident
            pl.BlockSpec((H, H), lambda i: (0, 0)),
            pl.BlockSpec((H, n_pad), lambda i: (0, 0)),
            pl.BlockSpec((8, w_pack), lambda i: (0, 0)),     # packed b1/b2/bo/alpha/beta
        ],
        out_specs=pl.BlockSpec((tb, n_pad), lambda i: (i, 0)),
        compiler_params=pltpu.CompilerParams(
            dimension_semantics=("parallel",)),              # v7x: shard batch over 2 TCs
        cost_estimate=pl.CostEstimate(
            flops=flops, transcendentals=transcendentals,
            bytes_accessed=bytes_accessed),
    )(x_in, w1, w2, wo, vec)
    return out_padded[:B, :num_tags]


def init_params(key, input_size, hidden_size, num_tags):
    """Deterministic synthetic parameters (PyTorch Linear-ish init), weights
    stored pre-transposed as (in_features, out_features), f32 masters."""
    ks = jax.random.split(key, 6)

    def linear(kw, kb, fan_in, fan_out):
        bound = 1.0 / jnp.sqrt(fan_in)
        w = jax.random.uniform(kw, (fan_in, fan_out), jnp.float32, -bound, bound)
        b = jax.random.uniform(kb, (1, fan_out), jnp.float32, -bound, bound)
        return w, b

    w1, b1 = linear(ks[0], ks[1], input_size, hidden_size)
    w2, b2 = linear(ks[2], ks[3], hidden_size, hidden_size)
    wo, bo = linear(ks[4], ks[5], hidden_size, num_tags)
    return {
        "w1": w1, "b1": b1,
        "w2": w2, "b2": b2,
        "wo": wo, "bo": bo,
        # RoSwish parameters (module defaults: alpha=0.817, beta=3.0)
        "alpha": jnp.full((1, hidden_size), 0.817, jnp.float32),
        "beta": jnp.full((1, hidden_size), 3.0, jnp.float32),
    }


def reference_forward(x, p):
    """Pure-JAX f32 reference of the PyTorch forward (is_training=False)."""
    def roswish(h):
        return (h + p["alpha"]) * jax.nn.sigmoid(h * p["beta"]) - p["alpha"] / 2
    h1 = roswish(x @ p["w1"] + p["b1"])
    h2 = roswish(h1 @ p["w2"] + p["b2"])
    return h2 @ p["wo"] + p["bo"]


if __name__ == "__main__":
    batch, input_size, hidden_size, num_tags = 8, 128, 128, 25

    key = jax.random.PRNGKey(0)
    k_x, k_p = jax.random.split(key)
    x = jax.random.normal(k_x, (batch, input_size), jnp.float32)
    params = init_params(k_p, input_size, hidden_size, num_tags)

    prepped = prepare_params(params)
    out = tweet_tagger_forward(x, prepped)
    out = jax.block_until_ready(out)

    ref = reference_forward(x, params)
    assert out.shape == (batch, num_tags)
    # bf16 weights + approx-reciprocal sigmoid vs. f32 reference -> loose tolerance.
    assert jnp.allclose(out, ref, atol=5e-2, rtol=5e-2)

    print("KERNEL_OK")
</pallas_src>

<mosaic_0001>
module attributes {stable_mosaic.version = 11 : i64} {
  func.func @tweet_tagger_kernel(%arg0: i32, %arg1: memref<8x128xf32, #tpu.memory_space<vmem>>, %arg2: memref<128x128xbf16, #tpu.memory_space<vmem>>, %arg3: memref<128x128xbf16, #tpu.memory_space<vmem>>, %arg4: memref<128x128xbf16, #tpu.memory_space<vmem>>, %arg5: memref<8x128xf32, #tpu.memory_space<vmem>>, %arg6: memref<8x128xf32, #tpu.memory_space<vmem>>) attributes {dimension_semantics = [#tpu.dimension_semantics<parallel>], iteration_bounds = array<i64: 1>, scalar_prefetch = 0 : i64, scratch_operands = 0 : i64, tpu.core_type = #tpu.core_type<tc>, window_params = [{transform_indices = @transform_0, window_bounds = array<i64: 8, 128>}, {pipeline_mode = #tpu.pipeline_mode<synchronous>, transform_indices = @transform_1, window_bounds = array<i64: 128, 128>}, {pipeline_mode = #tpu.pipeline_mode<synchronous>, transform_indices = @transform_2, window_bounds = array<i64: 128, 128>}, {pipeline_mode = #tpu.pipeline_mode<synchronous>, transform_indices = @transform_3, window_bounds = array<i64: 128, 128>}, {pipeline_mode = #tpu.pipeline_mode<synchronous>, transform_indices = @transform_4, window_bounds = array<i64: 8, 128>}, {transform_indices = @transform_5, window_bounds = array<i64: 8, 128>}]} {
    %c0 = arith.constant 0 : index
    %c0_0 = arith.constant 0 : index
    %0 = vector.load %arg1[%c0, %c0_0] : memref<8x128xf32, #tpu.memory_space<vmem>>, vector<8x128xf32>
    %c0_1 = arith.constant 0 : index
    %c0_2 = arith.constant 0 : index
    %1 = vector.load %arg5[%c0_1, %c0_2] : memref<8x128xf32, #tpu.memory_space<vmem>>, vector<8x128xf32>
    %2 = vector.extract_strided_slice %1 {offsets = [0, 0], sizes = [1, 128], strides = [1, 1]} : vector<8x128xf32> to vector<1x128xf32>
    %3 = vector.extract_strided_slice %1 {offsets = [1, 0], sizes = [1, 128], strides = [1, 1]} : vector<8x128xf32> to vector<1x128xf32>
    %4 = vector.extract_strided_slice %1 {offsets = [2, 0], sizes = [1, 128], strides = [1, 1]} : vector<8x128xf32> to vector<1x128xf32>
    %5 = vector.extract_strided_slice %1 {offsets = [3, 0], sizes = [1, 128], strides = [1, 1]} : vector<8x128xf32> to vector<1x128xf32>
    %6 = vector.extract_strided_slice %1 {offsets = [4, 0], sizes = [1, 128], strides = [1, 1]} : vector<8x128xf32> to vector<1x128xf32>
    %7 = vector.extract_strided_slice %1 {offsets = [5, 0], sizes = [1, 128], strides = [1, 1]} : vector<8x128xf32> to vector<1x128xf32>
    %8 = arith.truncf %0 : vector<8x128xf32> to vector<8x128xbf16>
    %c0_3 = arith.constant 0 : index
    %c0_4 = arith.constant 0 : index
    %9 = vector.load %arg2[%c0_3, %c0_4] : memref<128x128xbf16, #tpu.memory_space<vmem>>, vector<128x128xbf16>
    %cst = arith.constant dense<0.000000e+00> : vector<8x128xf32>
    %10 = tpu.matmul %8, %9, %cst {dimension_numbers = #tpu.dot_dimension_numbers<[1], [0], [0], [1], [0, 0, 1, 1], [], []>} : vector<8x128xbf16>, vector<128x128xbf16>, vector<8x128xf32> -> vector<8x128xf32>
    %11 = vector.broadcast %2 : vector<1x128xf32> to vector<8x128xf32>
    %12 = arith.addf %10, %11 : vector<8x128xf32>
    %cst_5 = arith.constant 0.000000e+00 : f32
    %13 = vector.broadcast %cst_5 : f32 to vector<8x128xf32>
    %14 = arith.subf %13, %12 : vector<8x128xf32>
    %15 = vector.broadcast %6 : vector<1x128xf32> to vector<8x128xf32>
    %16 = arith.mulf %14, %15 : vector<8x128xf32>
    %17 = math.exp %16 : vector<8x128xf32>
    %cst_6 = arith.constant 1.000000e+00 : f32
    %18 = vector.broadcast %cst_6 : f32 to vector<8x128xf32>
    %19 = arith.addf %18, %17 : vector<8x128xf32>
    %20 = tpu.reciprocal %19 {approx = true} : vector<8x128xf32> -> vector<8x128xf32>
    %21 = vector.broadcast %5 : vector<1x128xf32> to vector<8x128xf32>
    %22 = arith.addf %12, %21 : vector<8x128xf32>
    %23 = arith.mulf %22, %20 : vector<8x128xf32>
    %24 = vector.broadcast %7 : vector<1x128xf32> to vector<8x128xf32>
    %25 = arith.subf %23, %24 : vector<8x128xf32>
    %26 = arith.truncf %25 : vector<8x128xf32> to vector<8x128xbf16>
    %c0_7 = arith.constant 0 : index
    %c0_8 = arith.constant 0 : index
    %27 = vector.load %arg3[%c0_7, %c0_8] : memref<128x128xbf16, #tpu.memory_space<vmem>>, vector<128x128xbf16>
    %cst_9 = arith.constant dense<0.000000e+00> : vector<8x128xf32>
    %28 = tpu.matmul %26, %27, %cst_9 {dimension_numbers = #tpu.dot_dimension_numbers<[1], [0], [0], [1], [0, 0, 1, 1], [], []>} : vector<8x128xbf16>, vector<128x128xbf16>, vector<8x128xf32> -> vector<8x128xf32>
    %29 = vector.broadcast %3 : vector<1x128xf32> to vector<8x128xf32>
    %30 = arith.addf %28, %29 : vector<8x128xf32>
    %cst_10 = arith.constant 0.000000e+00 : f32
    %31 = vector.broadcast %cst_10 : f32 to vector<8x128xf32>
    %32 = arith.subf %31, %30 : vector<8x128xf32>
    %33 = vector.broadcast %6 : vector<1x128xf32> to vector<8x128xf32>
    %34 = arith.mulf %32, %33 : vector<8x128xf32>
    %35 = math.exp %34 : vector<8x128xf32>
    %cst_11 = arith.constant 1.000000e+00 : f32
    %36 = vector.broadcast %cst_11 : f32 to vector<8x128xf32>
    %37 = arith.addf %36, %35 : vector<8x128xf32>
    %38 = tpu.reciprocal %37 {approx = true} : vector<8x128xf32> -> vector<8x128xf32>
    %39 = vector.broadcast %5 : vector<1x128xf32> to vector<8x128xf32>
    %40 = arith.addf %30, %39 : vector<8x128xf32>
    %41 = arith.mulf %40, %38 : vector<8x128xf32>
    %42 = vector.broadcast %7 : vector<1x128xf32> to vector<8x128xf32>
    %43 = arith.subf %41, %42 : vector<8x128xf32>
    %44 = arith.truncf %43 : vector<8x128xf32> to vector<8x128xbf16>
    %c0_12 = arith.constant 0 : index
    %c0_13 = arith.constant 0 : index
    %45 = vector.load %arg4[%c0_12, %c0_13] : memref<128x128xbf16, #tpu.memory_space<vmem>>, vector<128x128xbf16>
    %cst_14 = arith.constant dense<0.000000e+00> : vector<8x128xf32>
    %46 = tpu.matmul %44, %45, %cst_14 {dimension_numbers = #tpu.dot_dimension_numbers<[1], [0], [0], [1], [0, 0, 1, 1], [], []>} : vector<8x128xbf16>, vector<128x128xbf16>, vector<8x128xf32> -> vector<8x128xf32>
    %47 = vector.broadcast %4 : vector<1x128xf32> to vector<8x128xf32>
    %48 = arith.addf %46, %47 : vector<8x128xf32>
    %c0_15 = arith.constant 0 : index
    %c0_16 = arith.constant 0 : index
    %49 = vector.load %arg6[%c0_15, %c0_16] : memref<8x128xf32, #tpu.memory_space<vmem>>, vector<8x128xf32>
    tpu.vector_store %arg6[%c0_15, %c0_16], %48 {strides = array<i32>} : memref<8x128xf32, #tpu.memory_space<vmem>>, vector<8x128xf32>,
    return
  }
  func.func @transform_0(%arg0: i32) -> (i32, i32) {
    %c0_i32 = arith.constant 0 : i32
    %c0_i32_0 = arith.constant 0 : i32
    return %arg0, %c0_i32 : i32, i32
  }
  func.func @transform_1(%arg0: i32) -> (i32, i32) {
    %c0_i32 = arith.constant 0 : i32
    %c0_i32_0 = arith.constant 0 : i32
    %c0_i32_1 = arith.constant 0 : i32
    return %c0_i32, %c0_i32_0 : i32, i32
  }
  func.func @transform_2(%arg0: i32) -> (i32, i32) {
    %c0_i32 = arith.constant 0 : i32
    %c0_i32_0 = arith.constant 0 : i32
    %c0_i32_1 = arith.constant 0 : i32
    return %c0_i32, %c0_i32_0 : i32, i32
  }
  func.func @transform_3(%arg0: i32) -> (i32, i32) {
    %c0_i32 = arith.constant 0 : i32
    %c0_i32_0 = arith.constant 0 : i32
    %c0_i32_1 = arith.constant 0 : i32
    return %c0_i32, %c0_i32_0 : i32, i32
  }
  func.func @transform_4(%arg0: i32) -> (i32, i32) {
    %c0_i32 = arith.constant 0 : i32
    %c0_i32_0 = arith.constant 0 : i32
    %c0_i32_1 = arith.constant 0 : i32
    return %c0_i32, %c0_i32_0 : i32, i32
  }
  func.func @transform_5(%arg0: i32) -> (i32, i32) {
    %c0_i32 = arith.constant 0 : i32
    %c0_i32_0 = arith.constant 0 : i32
    return %arg0, %c0_i32 : i32, i32
  }
}

</mosaic_0001>

<bundles_post_ra>
// kernel: tpu_custom_call.1
= control target key start
LH: loop header
LB: loop body
LE: loop exit
PB: predicated region body
PF: predicated region fallthrough
CT: control target
= control target key end

     0   :  { %10 = vsyncpa [#allocation3], 0  ;;  %s879_s0 = inlined_call_operand.hbm [shape: f32[8,128], index: 0, kind: input, shape index: {}]   ;;  %s880_s1 = inlined_call_operand.hbm [shape: bf16[128,128], index: 1, kind: input, shape index: {}]   ;;  %s881_s2 = inlined_call_operand.hbm [shape: bf16[128,128], index: 2, kind: input, shape index: {}]   ;;  %s882_s3 = inlined_call_operand.hbm [shape: bf16[128,128], index: 3, kind: input, shape index: {}]   ;;  %s883_s4 = inlined_call_operand.vmem [shape: f32[8,128], index: 4, kind: input, shape index: {}]   ;;  %s884_s5 = inlined_call_operand.hbm [shape: f32[8,128], index: 5, kind: output, shape index: {}]  }
   0x1   :  { %11 = vsyncpa [#allocation6], 0 }
   0x2   :  { %12 = vsyncpa [#allocation9], 0 }
   0x3   :  { %13 = vsyncpa [#allocation4], 0  ;;  %s722_s18 = smov [#allocation5]   ;;  %s604_s22 = scalar_lea.hbm %s880_s1, 1024 }
   0x4   :  { %s29_s19 = sshll.u32 %s722_s18, 4  ;;  %p605_p0 = scmp.ne.s32.totalorder %s880_s1, %s604_s22  ;;  %s30_s19 = int_to_ptr.vmem [resolvable:$true] %s29_s19 }
   0x5   :  { %p608_p1 = scmp.lt.u32.totalorder %s604_s22, %s880_s1 }
   0x7   :  { %p610_p2 = pnand %p608_p1, %p605_p0 }
   0x9   :  { %613 = shalt.err (!%p610_p2)
}
   0xa   :  { %s614_s27 = scalar_lea.vmem %s30_s19, 1024  ;;  %p619_p4 = scmp.lt.s32.totalorder %s30_s19, %s30_s19 }
   0xb   :  { %p615_p3 = scmp.ne.s32.totalorder %s30_s19, %s614_s27  ;;  %p620_p5 = scmp.lt.s32.totalorder %s614_s27, %s614_s27 }
   0xd   :  { %p621_p6 = por %p620_p5, %p619_p4 }
   0xf   :  { %p622_p7 = pnand %p621_p6, %p615_p3 }
  0x11   :  { %625 = shalt.err (!%p622_p7)
}
  0x12   :  { %s723_s28 = smov 64   ;;  %s724_s29 = smov 4  }
  0x13   :  { %35 = dma.hbm_to_vmem [thread:$0]  %s880_s1, 1024, %s30_s19, [#allocation6], %s723_s28, %s723_s28, %s724_s29  }
  0x14   :  { %s725_s7 = smov [#allocation2]   ;;  %s726_s9 = smov [#allocation7]  }
  0x15   :  { %s20_s8 = sshll.u32 %s725_s7, 4  ;;  %s41_s10 = sshll.u32 %s726_s9, 4  ;;  %s21_s8 = int_to_ptr.vmem [resolvable:$true] %s20_s8  ;;  %s42_s10 = int_to_ptr.vmem [resolvable:$true] %s41_s10 }
  0x16   :  { %s626_s13 = scalar_lea.hbm %s879_s0, 128 }
  0x17   :  { %p627_p8 = scmp.ne.s32.totalorder %s879_s0, %s626_s13  ;;  %p630_p9 = scmp.lt.u32.totalorder %s626_s13, %s879_s0 }
  0x19   :  { %p632_p10 = pnand %p630_p9, %p627_p8 }
  0x1b   :  { %635 = shalt.err (!%p632_p10)
}
  0x1c   :  { %s636_s1 = scalar_lea.vmem %s21_s8, 128  ;;  %p641_p12 = scmp.lt.s32.totalorder %s21_s8, %s21_s8 }
  0x1d   :  { %p637_p11 = scmp.ne.s32.totalorder %s21_s8, %s636_s1  ;;  %p642_p13 = scmp.lt.s32.totalorder %s636_s1, %s636_s1 }
  0x1f   :  { %p643_p0 = por %p642_p13, %p641_p12 }
  0x21   :  { %p644_p1 = pnand %p643_p0, %p637_p11 }
  0x23   :  { %647 = shalt.err (!%p644_p1)
}
  0x24   :  { %23 = dma.hbm_to_vmem [thread:$0]  %s879_s0, 128, %s21_s8, [#allocation3]  }
  0x25   :  { %s648_s22 = scalar_lea.hbm %s881_s2, 1024 }
  0x26   :  { %p649_p2 = scmp.ne.s32.totalorder %s881_s2, %s648_s22  ;;  %p652_p3 = scmp.lt.u32.totalorder %s648_s22, %s881_s2 }
  0x28   :  { %p654_p4 = pnand %p652_p3, %p649_p2 }
  0x2a   :  { %657 = shalt.err (!%p654_p4)
}
  0x2b   :  { %s658_s27 = scalar_lea.vmem %s42_s10, 1024  ;;  %p663_p6 = scmp.lt.s32.totalorder %s42_s10, %s42_s10 }
  0x2c   :  { %p659_p5 = scmp.ne.s32.totalorder %s42_s10, %s658_s27  ;;  %p664_p7 = scmp.lt.s32.totalorder %s658_s27, %s658_s27 }
  0x2e   :  { %p665_p8 = por %p664_p7, %p663_p6 }
  0x30   :  { %p666_p9 = pnand %p665_p8, %p659_p5 }
  0x32   :  { %669 = shalt.err (!%p666_p9)
}
  0x33   :  { %47 = dma.hbm_to_vmem [thread:$0]  %s881_s2, 1024, %s42_s10, [#allocation6], %s723_s28, %s723_s28, %s724_s29  }
  0x34   :  { %s727_s6 = smov [#allocation8]   ;;  %s670_s11 = scalar_lea.hbm %s882_s3, 1024 }
  0x35   :  { %s53_s7 = sshll.u32 %s727_s6, 4  ;;  %p671_p10 = scmp.ne.s32.totalorder %s882_s3, %s670_s11  ;;  %s54_s7 = int_to_ptr.vmem [resolvable:$true] %s53_s7 }
  0x36   :  { %p674_p11 = scmp.lt.u32.totalorder %s670_s11, %s882_s3 }
  0x38   :  { %p676_p12 = pnand %p674_p11, %p671_p10 }
  0x3a   :  { %679 = shalt.err (!%p676_p12)
}
  0x3b   :  { %s680_s16 = scalar_lea.vmem %s54_s7, 1024  ;;  %p685_p0 = scmp.lt.s32.totalorder %s54_s7, %s54_s7 }
  0x3c   :  { %p681_p13 = scmp.ne.s32.totalorder %s54_s7, %s680_s16  ;;  %p686_p1 = scmp.lt.s32.totalorder %s680_s16, %s680_s16 }
  0x3e   :  { %p687_p2 = por %p686_p1, %p685_p0 }
  0x40   :  { %p688_p3 = pnand %p687_p2, %p681_p13 }
  0x42   :  { %691 = shalt.err (!%p688_p3)
}
  0x43   :  { %59 = dma.hbm_to_vmem [thread:$0]  %s882_s3, 1024, %s54_s7, [#allocation9], %s723_s28, %s723_s28, %s724_s29  }
  0x44   :  { %714 = dma.done.wait [#allocation3], 128  }
  0x45   :  { %715 = vsyncadd [#allocation3], 4294967168 }
  0x46   :  { %716 = dma.done.wait [#allocation6], 2048  }
  0x47   :  { %717 = vsyncadd [#allocation6], 4294965248 }
  0x48   :  { %718 = dma.done.wait [#allocation9], 1024  }
  0x49   :  { %719 = vsyncadd [#allocation9], 4294966272  ;;  %v728_v0 = vmov 0.0   ;;  %vm729_vm0 = vmmov 0   ;;  %v572_v1 = vld [vmem:[#allocation5] sm:$0xff]   ;;  %v573_v2 = vld [vmem:[#allocation5 + $0x8] sm:$0xff]   ;;  %v94_v19 = vlaneseq }
  0x4a   :  { %503 = vmatprep.subr.bf16.mxu0 %v728_v0  ;;  %519 = vmatprep.mubr.msk.bf16.mxu0 %vm729_vm0, %v728_v0  ;;  %v574_v3 = vld [vmem:[#allocation5 + $0x10] sm:$0xff]   ;;  %v575_v4 = vld [vmem:[#allocation5 + $0x18] sm:$0xff]   ;;  %v576_v5 = vld [vmem:[#allocation5 + $0x20] sm:$0xff]  }
  0x4b   :  { %523 = vmatprep.subr.bf16.mxu1 %v728_v0  ;;  %539 = vmatprep.mubr.msk.bf16.mxu1 %vm729_vm0, %v728_v0  ;;  %v577_v6 = vld [vmem:[#allocation5 + $0x28] sm:$0xff]   ;;  %v578_v7 = vld [vmem:[#allocation5 + $0x30] sm:$0xff]   ;;  %v579_v8 = vld [vmem:[#allocation5 + $0x38] sm:$0xff]   ;;  %v841_v20 = vshrl.u32 %v94_v19, 7 }
  0x4c   :  { %504 = vmatpush3.bf16.msra.mxu0 %v572_v1  ;;  %v75_v9 = vld [vmem:[#allocation2] sm:$0xff]  ;;  %v580_v11 = vld [vmem:[#allocation7] sm:$0xff]   ;;  %v581_v12 = vld [vmem:[#allocation7 + $0x8] sm:$0xff]  }
  0x4d   :  { %505 = vmatprep.subr.bf16.mxu0 %v728_v0  ;;  %v77_v10 = vpack.c.bf16 %v75_v9, %v75_v9  ;;  %524 = vmatpush3.bf16.msra.mxu1 %v580_v11  ;;  %v582_v13 = vld [vmem:[#allocation7 + $0x10] sm:$0xff]   ;;  %v583_v14 = vld [vmem:[#allocation7 + $0x18] sm:$0xff]   ;;  %v584_v15 = vld [vmem:[#allocation7 + $0x20] sm:$0xff]   ;;  %v96_v21 = vsub.s32 0, %v841_v20  ;;  %v189_v24 = vsub.s32 4, %v841_v20  ;;  %v198_v36 = vsub.s32 3, %v841_v20 }
  0x4e   :  { %525 = vmatprep.subr.bf16.mxu1 %v728_v0  ;;  %v585_v16 = vld [vmem:[#allocation7 + $0x28] sm:$0xff]   ;;  %v586_v17 = vld [vmem:[#allocation7 + $0x30] sm:$0xff]   ;;  %v587_v18 = vld [vmem:[#allocation7 + $0x38] sm:$0xff]   ;;  %v204_v38 = vsub.s32 5, %v841_v20  ;;  %v226_v53 = vsub.s32 1, %v841_v20 }
  0x4f   :  { %v847_v22 = vld [vmem:[%s883_s4] sm:$0xff]  ;;  %v588_v45 = vld [vmem:[#allocation8] sm:$0xff]   ;;  %v589_v46 = vld [vmem:[#allocation8 + $0x8] sm:$0xff]   ;;  %s730_s4 = smov [#allocation10]  }
  0x50   :  { %506 = vmatpush3.bf16.msra.mxu0 %v573_v2  ;;  %v97_v23 = vrot.slane %v847_v22, %v96_v21  ;;  %v190_v27 = vrot.slane %v847_v22, %v189_v24  ;;  %v199_v37 = vrot.slane %v847_v22, %v198_v36  ;;  %v205_v40 = vrot.slane %v847_v22, %v204_v38  ;;  %v590_v47 = vld [vmem:[#allocation8 + $0x10] sm:$0xff]   ;;  %v591_v48 = vld [vmem:[#allocation8 + $0x18] sm:$0xff]   ;;  %v592_v49 = vld [vmem:[#allocation8 + $0x20] sm:$0xff]   ;;  %s441_s29 = sshll.u32 %s730_s4, 4  ;;  %s442_s29 = int_to_ptr.vmem [resolvable:$true] %s441_s29 }
  0x51   :  { %507 = vmatprep.subr.bf16.mxu0 %v728_v0  ;;  %526 = vmatpush3.bf16.msra.mxu1 %v581_v12  ;;  %v593_v50 = vld [vmem:[#allocation8 + $0x28] sm:$0xff]   ;;  %v594_v51 = vld [vmem:[#allocation8 + $0x30] sm:$0xff]   ;;  %v595_v52 = vld [vmem:[#allocation8 + $0x38] sm:$0xff]   ;;  %v227_v54 = vrot.slane %v847_v22, %v226_v53  ;;  %s692_s17 = scalar_lea.vmem %s442_s29, 128  ;;  %p697_p5 = scmp.lt.s32.totalorder %s442_s29, %s442_s29 }
  0x52   :  { %527 = vmatprep.subr.bf16.mxu1 %v728_v0  ;;  %p693_p4 = scmp.ne.s32.totalorder %s442_s29, %s692_s17  ;;  %p698_p6 = scmp.lt.s32.totalorder %s692_s17, %s692_s17 }
  0x54   :  { %508 = vmatpush3.bf16.msra.mxu0 %v574_v3  ;;  %p699_p7 = por %p698_p6, %p697_p5 }
  0x55   :  { %509 = vmatprep.subr.bf16.mxu0 %v728_v0  ;;  %528 = vmatpush3.bf16.msra.mxu1 %v582_v13 }
  0x56   :  { %529 = vmatprep.subr.bf16.mxu1 %v728_v0  ;;  %p700_p8 = pnand %p699_p7, %p693_p4 }
  0x58   :  { %510 = vmatpush3.bf16.msra.mxu0 %v575_v4 }
  0x59   :  { %511 = vmatprep.subr.bf16.mxu0 %v728_v0  ;;  %530 = vmatpush3.bf16.msra.mxu1 %v583_v14 }
  0x5a   :  { %531 = vmatprep.subr.bf16.mxu1 %v728_v0 }
  0x5c   :  { %512 = vmatpush3.bf16.msra.mxu0 %v576_v5 }
  0x5d   :  { %513 = vmatprep.subr.bf16.mxu0 %v728_v0  ;;  %532 = vmatpush3.bf16.msra.mxu1 %v584_v15 }
  0x5e   :  { %533 = vmatprep.subr.bf16.mxu1 %v728_v0 }
  0x60   :  { %514 = vmatpush3.bf16.msra.mxu0 %v577_v6  ;;  %v344_v6 = vsub.s32 2, %v841_v20 }
  0x61   :  { %515 = vmatprep.subr.bf16.mxu0 %v728_v0  ;;  %534 = vmatpush3.bf16.msra.mxu1 %v585_v16 }
  0x62   :  { %535 = vmatprep.subr.bf16.mxu1 %v728_v0 }
  0x64   :  { %516 = vmatpush3.bf16.msra.mxu0 %v578_v7  ;;  %v345_v7 = vrot.slane %v847_v22, %v344_v6 }
  0x65   :  { %517 = vmatprep.subr.bf16.mxu0 %v728_v0  ;;  %536 = vmatpush3.bf16.msra.mxu1 %v586_v17 }
  0x66   :  { %537 = vmatprep.subr.bf16.mxu1 %v728_v0 }
  0x68   :  { %518 = vmatpush3.bf16.msra.mxu0 %v579_v8 }
  0x69   :  { %543 = vmatprep.subr.bf16.mxu0 %v728_v0  ;;  %538 = vmatpush3.bf16.msra.mxu1 %v587_v18 }
  0x6b   :  { %520 = vmatmul.mubr.bf16.vlgmr.msra.gmra.mrb[0].mxu0 %v77_v10 }
  0x6c   :  { %559 = vmatprep.mubr.msk.bf16.mxu0 %vm729_vm0, %v728_v0  ;;  %544 = vmatpush3.bf16.msra.mxu0 %v588_v45 }
  0x6d   :  { %545 = vmatprep.subr.bf16.mxu0 %v728_v0 }
  0x70   :  { %546 = vmatpush3.bf16.msra.mxu0 %v589_v46 }
  0x71   :  { %547 = vmatprep.subr.bf16.mxu0 %v728_v0 }
  0x74   :  { %548 = vmatpush3.bf16.msra.mxu0 %v590_v47 }
  0x75   :  { %549 = vmatprep.subr.bf16.mxu0 %v728_v0 }
  0x78   :  { %550 = vmatpush3.bf16.msra.mxu0 %v591_v48 }
  0x79   :  { %551 = vmatprep.subr.bf16.mxu0 %v728_v0 }
  0x7c   :  { %552 = vmatpush3.bf16.msra.mxu0 %v592_v49 }
  0x7d   :  { %553 = vmatprep.subr.bf16.mxu0 %v728_v0 }
  0x80   :  { %554 = vmatpush3.bf16.msra.mxu0 %v593_v50 }
  0x81   :  { %555 = vmatprep.subr.bf16.mxu0 %v728_v0 }
  0x84   :  { %556 = vmatpush3.bf16.msra.mxu0 %v594_v51 }
  0x85   :  { %557 = vmatprep.subr.bf16.mxu0 %v728_v0 }
  0x88   :  { %558 = vmatpush3.bf16.msra.mxu0 %v595_v52 }
 0x13e   :  { %v180_v25 = vpop.f32.mrb[0].mxu0 }
 0x13f   :  { %v181_v26 = vadd.f32 %v180_v25, %v97_v23  ;;  %v521_v28 = vpop.f32.mrb[1].mxu0 }
 0x140   :  { %v183_v29 = vpop.f32.mrb[2].mxu0 }
 0x141   :  { %v186_v30 = vsub.f32 0.0, %v181_v26  ;;  %v522_v31 = vpop.f32.mrb[3].mxu0  ;;  %v200_v39 = vadd.f32 %v199_v37, %v181_v26 }
 0x143   :  { %v191_v32 = vmul.f32 %v190_v27, %v186_v30 }
 0x145   :  { %v192_v33 = vmul.f32 1.442695, %v191_v32 }
 0x147   :  { %596 = vpow2.f32 %v192_v33 }
 0x151   :  { %v597_v34 = vpop.eup %596 }
 0x152   :  { %v194_v35 = vadd.f32 1.0, %v597_v34 }
 0x154   :  { %598 = vrcp.f32 %v194_v35 }
 0x15e   :  { %v599_v41 = vpop.eup %598 }
 0x15f   :  { %v201_v42 = vmul.f32 %v599_v41, %v200_v39 }
 0x161   :  { %v206_v43 = vsub.f32 %v201_v42, %v205_v40 }
 0x163   :  { %v207_v44 = vpack.c.bf16 %v206_v43, %v206_v43 }
 0x165   :  { %540 = vmatmul.mubr.bf16.vlgmr.msra.gmra.mrb[0].mxu1 %v207_v44 }
 0x238   :  { %v310_v55 = vpop.f32.mrb[0].mxu1 }
 0x239   :  { %v311_v56 = vadd.f32 %v310_v55, %v227_v54  ;;  %v541_v57 = vpop.f32.mrb[1].mxu1 }
 0x23a   :  { %v313_v58 = vpop.f32.mrb[2].mxu1 }
 0x23b   :  { %v316_v59 = vsub.f32 0.0, %v311_v56  ;;  %v542_v60 = vpop.f32.mrb[3].mxu1  ;;  %v322_v2 = vadd.f32 %v311_v56, %v199_v37 }
 0x23d   :  { %v317_v61 = vmul.f32 %v316_v59, %v190_v27 }
 0x23f   :  { %v318_v62 = vmul.f32 1.442695, %v317_v61 }
 0x241   :  { %600 = vpow2.f32 %v318_v62 }
 0x24b   :  { %v601_v63 = vpop.eup %600 }
 0x24c   :  { %v320_v1 = vadd.f32 1.0, %v601_v63 }
 0x24e   :  { %602 = vrcp.f32 %v320_v1 }
 0x258   :  { %v603_v0 = vpop.eup %602 }
 0x259   :  { %v323_v3 = vmul.f32 %v603_v0, %v322_v2 }
 0x25b   :  { %v324_v4 = vsub.f32 %v323_v3, %v205_v40 }
 0x25d   :  { %v325_v5 = vpack.c.bf16 %v324_v4, %v324_v4 }
 0x25f   :  { %560 = vmatmul.mubr.bf16.vlgmr.msra.gmra.mrb[4].mxu0 %v325_v5 }
 0x332   :  { %v428_v8 = vpop.f32.mrb[4].mxu0 }
 0x333   :  { %v429_v9 = vadd.f32 %v428_v8, %v345_v7  ;;  %v561_v10 = vpop.f32.mrb[5].mxu0 }
 0x334   :  { %v431_v11 = vpop.f32.mrb[6].mxu0 }
 0x335   :  { %434 = vst [vmem:[#allocation10] sm:$0xff] %v429_v9  ;;  %v562_v12 = vpop.f32.mrb[7].mxu0 }
 0x336   :  { %703 = shalt.err (!%p700_p8)
}
 0x337   :  { %s704_s19 = scalar_lea.hbm %s884_s5, 128 }
 0x338   :  { %p705_p9 = scmp.ne.s32.totalorder %s884_s5, %s704_s19  ;;  %p708_p10 = scmp.lt.u32.totalorder %s704_s19, %s884_s5 }
 0x33a   :  { %p710_p11 = pnand %p708_p10, %p705_p9 }
 0x33c   :  { %713 = shalt.err (!%p710_p11)
}
 0x33d   :  { %444 = dma.vmem_to_hbm [thread:$0]  %s442_s29, 128, %s884_s5, [#allocation4]  }
 0x33e   :  { %720 = dma.done.wait [#allocation4], 128  }
 0x33f   :  { %721 = vsyncadd [#allocation4], 4294967168 }
 0x340   :  { %448 = vsyncpa [#allocation3], 1 }
 0x341   :  { %449 = vsyncpa [#allocation6], 1 }
 0x342   :  { %450 = vsyncpa [#allocation9], 1 }
 0x343   :  { %451 = vsyncpa [#allocation4], 1 }

</bundles_post_ra>
